<compile_context>
chip_gen: v5e
topology: v5e:2x2
jax: 0.10.0
libtpu: 0.0.40
codegen_flags: <defaults>
</compile_context>

<pallas_src>
import math

import jax
import jax.numpy as jnp
from jax.experimental import pallas as pl
from jax.experimental.pallas import tpu as pltpu


# --------------------------------------------------------------------------------------
# Small helpers
# --------------------------------------------------------------------------------------
def _round_up(x, m):
    return ((x + m - 1) // m) * m


def _lane_pad(dim, tq, multi_step):
    """Smallest padded dim so that (tq * padded_dim) % 128 == 0 for blocked lane dims."""
    if not multi_step:
        return dim                      # block equals the full array -> no constraint
    m = 128 // math.gcd(tq, 128)
    return _round_up(dim, m)


def _vmem_limit_bytes():
    """Generation-aware VMEM cap: capacity - 16 MiB (48 MiB on v7x, ~112 MiB on v5e/v6e)."""
    cap = 64 * 1024 * 1024
    try:
        info = pltpu.get_tpu_info()
        cap = int(getattr(info, "vmem_capacity_bytes", cap)) or cap
    except Exception:
        pass
    return max(cap - 16 * 1024 * 1024, 16 * 1024 * 1024)


def _vmem_estimate(N, tq, fp, gp, K, x_itemsize, c_itemsize):
    """Rough per-kernel VMEM footprint (invariants single-buffered, blocks double-buffered)."""
    invariants = N * N * c_itemsize + K * fp * gp * c_itemsize + N * gp * 4
    streamed = 2 * N * tq * fp * x_itemsize + 2 * N * tq * gp * 4
    scratch = (4 * N * tq * fp * 4          # X0 / running power / Xt[k-2] / Xt[k-1] (f32)
               + N * tq * fp * c_itemsize   # bf16 cast of the current term
               + (tq + 1) * N * gp * 4)     # per-example accumulators + bias
    return invariants + streamed + scratch


def _default_block_q(Q, N, F, G, K, x_itemsize, c_itemsize, vmem_limit):
    """Largest batch tile that keeps >= 2 grid steps (>= 4 if possible) and fits VMEM."""
    if Q == 1:
        return 1
    min_steps = 4 if Q >= 4 else 2
    candidates = [t for t in range(1, Q + 1) if Q % t == 0 and Q // t >= min_steps]
    for tq in sorted(candidates, reverse=True):
        fp = _lane_pad(F, tq, True)
        gp = _lane_pad(G, tq, True)
        if _vmem_estimate(N, tq, fp, gp, K, x_itemsize, c_itemsize) <= 0.7 * vmem_limit:
            return tq
    return 1


# --------------------------------------------------------------------------------------
# Kernel
# --------------------------------------------------------------------------------------
def _make_tgcn_cheb_kernel(K, TQ, F_pad, compute_dtype):
    """K and TQ are static, so the recurrence, the k-sum and the per-example weight
    contraction are fully unrolled in-kernel."""

    def kernel(L_ref, w_ref, b_ref, x_ref, o_ref):
        L = L_ref[...]                                    # (N, N)        compute dtype
        X0 = x_ref[...].astype(jnp.float32)               # (N, TQ*F_pad) f32 state
        bias = b_ref[...].astype(jnp.float32)             # (N, G_pad)

        accs = [None] * TQ                                 # per-example (N, G_pad) f32

        def accumulate(k, term):
            # Dense (F_pad, G_pad) weight per order: no block-diagonal redundancy.
            tc = term.astype(compute_dtype)
            wk = w_ref[k]                                  # (F_pad, G_pad)
            for q in range(TQ):
                contrib = jnp.dot(tc[:, q * F_pad:(q + 1) * F_pad], wk,
                                  preferred_element_type=jnp.float32)
                accs[q] = contrib if accs[q] is None else accs[q] + contrib

        # --- Chebyshev recurrence (as written in the PyTorch module), interleaved with
        #     the weight contraction so only ~3 wide f32 terms stay live. ---------------
        accumulate(0, X0)                                  # Xt[0] = X0
        if K > 1:
            x_pow = jnp.dot(L, X0.astype(compute_dtype),
                            preferred_element_type=jnp.float32)          # L X0
            accumulate(1, x_pow)                           # Xt[1]
            t_km2, t_km1 = X0, x_pow
            for k in range(2, K):
                x_pow = jnp.dot(L, x_pow.astype(compute_dtype),
                                preferred_element_type=jnp.float32)      # L^k X0
                t_k = 2.0 * x_pow - t_km2                  # Xt[k] = 2 L^k X0 - Xt[k-2]
                accumulate(k, t_k)
                t_km2, t_km1 = t_km1, t_k

        # Lane-dense output tile (N, TQ*G_pad); bias broadcast over the in-block examples.
        o_ref[...] = jnp.concatenate([acc + bias for acc in accs], axis=-1)

    return kernel


def _pallas_forward(kernel, L_c, w_c, b_p, x_wide, *, N, Q, TQ, Fp, Gp, steps,
                    vmem_bytes, resident_invariants):
    if resident_invariants:
        # Grid-invariant operands live whole in VMEM: one copy, no double-buffering.
        inv = pl.BlockSpec(memory_space=pltpu.MemorySpace.VMEM)
        in_specs = [inv, inv, inv,
                    pl.BlockSpec((N, TQ * Fp), lambda qb: (0, qb))]
    else:
        # Fallback: constant-index blocked specs (double-buffered but universally supported).
        in_specs = [pl.BlockSpec((N, N), lambda qb: (0, 0)),
                    pl.BlockSpec(w_c.shape, lambda qb: (0, 0, 0)),
                    pl.BlockSpec((N, Gp), lambda qb: (0, 0)),
                    pl.BlockSpec((N, TQ * Fp), lambda qb: (0, qb))]

    return pl.pallas_call(
        kernel,
        out_shape=jax.ShapeDtypeStruct((N, Q * Gp), jnp.float32),
        grid=(steps,),
        in_specs=in_specs,
        out_specs=pl.BlockSpec((N, TQ * Gp), lambda qb: (0, qb)),
        compiler_params=pltpu.CompilerParams(
            dimension_semantics=("parallel",),            # batch blocks are independent
            vmem_limit_bytes=vmem_bytes),
    )(L_c, w_c, b_p, x_wide)


# --------------------------------------------------------------------------------------
# Public wrapper
# --------------------------------------------------------------------------------------
def tgcn_cheb_forward(x, L, weight, bias=None, *, block_q=None, use_bf16=True):
    """x: (Q, N, F), L: (N, N), weight: (K, F, G), bias: (1, N, G) -> (Q, N, G)."""
    Q, N, F = x.shape
    K, Fw, G = weight.shape
    assert Fw == F
    if bias is None:
        bias = jnp.zeros((1, N, G), dtype=jnp.float32)

    compute_dtype = jnp.bfloat16 if use_bf16 else jnp.float32
    c_itemsize = jnp.dtype(compute_dtype).itemsize
    x_stream_dtype = compute_dtype          # stream x at MXU precision (f32 in exact path)
    x_itemsize = jnp.dtype(x_stream_dtype).itemsize

    vmem_limit = _vmem_limit_bytes()

    # --- batch tile selection: >= 2 (ideally >= 4) grid steps, VMEM-bounded -------------
    if block_q is None:
        TQ = _default_block_q(Q, N, F, G, K, x_itemsize, c_itemsize, vmem_limit)
    else:
        TQ = int(block_q)
        assert Q % TQ == 0, "block_q must divide Q"
    steps = Q // TQ
    multi = steps > 1

    # Pad feature dims (instead of forcing TQ up) so blocked lane dims are 128-multiples.
    Fp = _lane_pad(F, TQ, multi)
    Gp = _lane_pad(G, TQ, multi)

    # --- wrapper-side layout plumbing (one-time, outside the kernel) --------------------
    # x: (Q, N, F) -> zero-pad features -> (N, Q*Fp), streamed at compute precision.
    x_p = x.astype(x_stream_dtype)
    if Fp != F:
        x_p = jnp.pad(x_p, ((0, 0), (0, 0), (0, Fp - F)))
    x_wide = jnp.transpose(x_p, (1, 0, 2)).reshape(N, Q * Fp)

    L_c = L.astype(compute_dtype)

    # Dense per-order weight (K, Fp, Gp): no TQxTQ block-diagonal expansion.
    w_p = weight.astype(jnp.float32)
    if Fp != F or Gp != G:
        w_p = jnp.pad(w_p, ((0, 0), (0, Fp - F), (0, Gp - G)))
    w_c = w_p.astype(compute_dtype)

    # Bias passed once as (N, Gp); broadcast over the in-block examples in-kernel.
    b_p = jnp.reshape(bias, (N, G)).astype(jnp.float32)
    if Gp != G:
        b_p = jnp.pad(b_p, ((0, 0), (0, Gp - G)))

    vmem_needed = _vmem_estimate(N, TQ, Fp, Gp, K, x_itemsize, c_itemsize)
    vmem_bytes = int(min(vmem_limit, max(2 * vmem_needed, 32 * 1024 * 1024)))

    kernel = _make_tgcn_cheb_kernel(K, TQ, Fp, compute_dtype)

    kwargs = dict(N=N, Q=Q, TQ=TQ, Fp=Fp, Gp=Gp, steps=steps, vmem_bytes=vmem_bytes)
    try:
        out_wide = _pallas_forward(kernel, L_c, w_c, b_p, x_wide,
                                   resident_invariants=True, **kwargs)
    except Exception:
        # Graceful fallback for Pallas versions without whole-array VMEM operand placement.
        out_wide = _pallas_forward(kernel, L_c, w_c, b_p, x_wide,
                                   resident_invariants=False, **kwargs)

    # (N, Q*Gp) -> (Q, N, Gp) -> strip output-channel padding.
    out = out_wide.reshape(N, Q, Gp).transpose(1, 0, 2)
    if Gp != G:
        out = out[..., :G]
    return out


# --------------------------------------------------------------------------------------
# Pure-JAX reference (replica of the PyTorch forward, same as-written recurrence)
# --------------------------------------------------------------------------------------
def tgcn_cheb_reference(x, L, weight, bias):
    K = weight.shape[0]
    Xt = [x]
    X = x
    if K > 1:
        X = jnp.einsum('nm,qmf->qnf', L, X)
        Xt.append(X)
    for k in range(2, K):
        X = jnp.einsum('nm,qmf->qnf', L, X)
        Xt.append(2.0 * X - Xt[k - 2])
    xc = jnp.stack(Xt, axis=0)                              # (K, Q, N, F)
    out = jnp.einsum('kqnf,kfg->qng', xc, weight)
    return out + bias


if __name__ == "__main__":
    # Small shapes consistent with the module's forward:
    Q, N, F, G, K = 2, 16, 4, 8, 3      # batch, vertices, in_ch, out_ch, filter_order

    key = jax.random.PRNGKey(0)
    k_L, k_x, k_w, k_b = jax.random.split(key, 4)

    # Symmetric "laplacian-like" matrix.
    A = jax.random.normal(k_L, (N, N), dtype=jnp.float32)
    L = 0.5 * (A + A.T) / float(N)

    x = jax.random.normal(k_x, (Q, N, F), dtype=jnp.float32)

    # Deterministic parameter init matching reset_parameters():
    # stdv = 1 / sqrt(in_channels * filter_order), uniform(-stdv, stdv)
    stdv = 1.0 / math.sqrt(F * K)
    weight = jax.random.uniform(k_w, (K, F, G), dtype=jnp.float32,
                                minval=-stdv, maxval=stdv)
    bias = jax.random.uniform(k_b, (1, N, G), dtype=jnp.float32,
                              minval=-stdv, maxval=stdv)

    ref = tgcn_cheb_reference(x, L, weight, bias)

    # f32-operand path: tight check against the reference.
    out_f32 = jax.block_until_ready(
        tgcn_cheb_forward(x, L, weight, bias, use_bf16=False))
    assert out_f32.shape == (Q, N, G)
    assert jnp.allclose(out_f32, ref, rtol=1e-5, atol=1e-5), "f32 kernel mismatch"

    # bf16-operand path (f32 recurrence state + f32 accumulation): looser tolerance.
    out_bf16 = jax.block_until_ready(
        tgcn_cheb_forward(x, L, weight, bias, use_bf16=True))
    assert out_bf16.shape == (Q, N, G)
    assert jnp.allclose(out_bf16, ref, rtol=5e-2, atol=5e-2), "bf16 kernel mismatch"

    print("KERNEL_OK")
</pallas_src>

<mosaic_0001>
module attributes {stable_mosaic.version = 11 : i64} {
  func.func @kernel(%arg0: i32, %arg1: memref<16x16xf32, #tpu.memory_space<vmem>>, %arg2: memref<3x128x128xf32, #tpu.memory_space<vmem>>, %arg3: memref<16x128xf32, #tpu.memory_space<vmem>>, %arg4: memref<16x128xf32, #tpu.memory_space<vmem>>, %arg5: memref<16x128xf32, #tpu.memory_space<vmem>>) attributes {dimension_semantics = [#tpu.dimension_semantics<parallel>], iteration_bounds = array<i64: 2>, scalar_prefetch = 0 : i64, scratch_operands = 0 : i64, tpu.core_type = #tpu.core_type<tc>, window_params = [{pipeline_mode = #tpu.pipeline_mode<synchronous>, transform_indices = @transform_0, window_bounds = array<i64: 16, 16>}, {pipeline_mode = #tpu.pipeline_mode<synchronous>, transform_indices = @transform_1, window_bounds = array<i64: 3, 128, 128>}, {pipeline_mode = #tpu.pipeline_mode<synchronous>, transform_indices = @transform_2, window_bounds = array<i64: 16, 128>}, {transform_indices = @transform_3, window_bounds = array<i64: 16, 128>}, {transform_indices = @transform_4, window_bounds = array<i64: 16, 128>}]} {
    %c0 = arith.constant 0 : index
    %c0_0 = arith.constant 0 : index
    %0 = vector.load %arg1[%c0, %c0_0] : memref<16x16xf32, #tpu.memory_space<vmem>>, vector<16x16xf32>
    %c0_1 = arith.constant 0 : index
    %c0_2 = arith.constant 0 : index
    %1 = vector.load %arg4[%c0_1, %c0_2] : memref<16x128xf32, #tpu.memory_space<vmem>>, vector<16x128xf32>
    %c0_3 = arith.constant 0 : index
    %c0_4 = arith.constant 0 : index
    %2 = vector.load %arg3[%c0_3, %c0_4] : memref<16x128xf32, #tpu.memory_space<vmem>>, vector<16x128xf32>
    %c0_5 = arith.constant 0 : index
    %c0_6 = arith.constant 0 : index
    %c0_7 = arith.constant 0 : index
    %3 = vector.load %arg2[%c0_5, %c0_6, %c0_7] : memref<3x128x128xf32, #tpu.memory_space<vmem>>, vector<1x128x128xf32>
    %4 = vector.shape_cast %3 : vector<1x128x128xf32> to vector<128x128xf32>
    %cst = arith.constant dense<0.000000e+00> : vector<16x128xf32>
    %5 = tpu.matmul %1, %4, %cst {dimension_numbers = #tpu.dot_dimension_numbers<[1], [0], [0], [1], [0, 0, 1, 1], [], []>} : vector<16x128xf32>, vector<128x128xf32>, vector<16x128xf32> -> vector<16x128xf32>
    %cst_8 = arith.constant dense<0.000000e+00> : vector<16x128xf32>
    %6 = tpu.matmul %0, %1, %cst_8 {dimension_numbers = #tpu.dot_dimension_numbers<[1], [0], [0], [1], [0, 0, 1, 1], [], []>} : vector<16x16xf32>, vector<16x128xf32>, vector<16x128xf32> -> vector<16x128xf32>
    %c1 = arith.constant 1 : index
    %c0_9 = arith.constant 0 : index
    %c0_10 = arith.constant 0 : index
    %7 = vector.load %arg2[%c1, %c0_9, %c0_10] : memref<3x128x128xf32, #tpu.memory_space<vmem>>, vector<1x128x128xf32>
    %8 = vector.shape_cast %7 : vector<1x128x128xf32> to vector<128x128xf32>
    %cst_11 = arith.constant dense<0.000000e+00> : vector<16x128xf32>
    %9 = tpu.matmul %6, %8, %cst_11 {dimension_numbers = #tpu.dot_dimension_numbers<[1], [0], [0], [1], [0, 0, 1, 1], [], []>} : vector<16x128xf32>, vector<128x128xf32>, vector<16x128xf32> -> vector<16x128xf32>
    %10 = arith.addf %5, %9 : vector<16x128xf32>
    %cst_12 = arith.constant dense<0.000000e+00> : vector<16x128xf32>
    %11 = tpu.matmul %0, %6, %cst_12 {dimension_numbers = #tpu.dot_dimension_numbers<[1], [0], [0], [1], [0, 0, 1, 1], [], []>} : vector<16x16xf32>, vector<16x128xf32>, vector<16x128xf32> -> vector<16x128xf32>
    %cst_13 = arith.constant 2.000000e+00 : f32
    %12 = vector.broadcast %cst_13 : f32 to vector<16x128xf32>
    %13 = arith.mulf %12, %11 : vector<16x128xf32>
    %14 = arith.subf %13, %1 : vector<16x128xf32>
    %c2 = arith.constant 2 : index
    %c0_14 = arith.constant 0 : index
    %c0_15 = arith.constant 0 : index
    %15 = vector.load %arg2[%c2, %c0_14, %c0_15] : memref<3x128x128xf32, #tpu.memory_space<vmem>>, vector<1x128x128xf32>
    %16 = vector.shape_cast %15 : vector<1x128x128xf32> to vector<128x128xf32>
    %cst_16 = arith.constant dense<0.000000e+00> : vector<16x128xf32>
    %17 = tpu.matmul %14, %16, %cst_16 {dimension_numbers = #tpu.dot_dimension_numbers<[1], [0], [0], [1], [0, 0, 1, 1], [], []>} : vector<16x128xf32>, vector<128x128xf32>, vector<16x128xf32> -> vector<16x128xf32>
    %18 = arith.addf %10, %17 : vector<16x128xf32>
    %19 = arith.addf %18, %2 : vector<16x128xf32>
    %c0_17 = arith.constant 0 : index
    %c0_18 = arith.constant 0 : index
    %20 = vector.load %arg5[%c0_17, %c0_18] : memref<16x128xf32, #tpu.memory_space<vmem>>, vector<16x128xf32>
    tpu.vector_store %arg5[%c0_17, %c0_18], %19 {strides = array<i32>} : memref<16x128xf32, #tpu.memory_space<vmem>>, vector<16x128xf32>,
    return
  }
  func.func @transform_0(%arg0: i32) -> (i32, i32) {
    %c0_i32 = arith.constant 0 : i32
    %c0_i32_0 = arith.constant 0 : i32
    %c0_i32_1 = arith.constant 0 : i32
    return %c0_i32, %c0_i32_0 : i32, i32
  }
  func.func @transform_1(%arg0: i32) -> (i32, i32, i32) {
    %c0_i32 = arith.constant 0 : i32
    %c0_i32_0 = arith.constant 0 : i32
    %c0_i32_1 = arith.constant 0 : i32
    %c0_i32_2 = arith.constant 0 : i32
    return %c0_i32, %c0_i32_0, %c0_i32_1 : i32, i32, i32
  }
  func.func @transform_2(%arg0: i32) -> (i32, i32) {
    %c0_i32 = arith.constant 0 : i32
    %c0_i32_0 = arith.constant 0 : i32
    %c0_i32_1 = arith.constant 0 : i32
    return %c0_i32, %c0_i32_0 : i32, i32
  }
  func.func @transform_3(%arg0: i32) -> (i32, i32) {
    %c0_i32 = arith.constant 0 : i32
    %c0_i32_0 = arith.constant 0 : i32
    return %c0_i32, %arg0 : i32, i32
  }
  func.func @transform_4(%arg0: i32) -> (i32, i32) {
    %c0_i32 = arith.constant 0 : i32
    %c0_i32_0 = arith.constant 0 : i32
    return %c0_i32, %arg0 : i32, i32
  }
}

module attributes {stable_mosaic.version = 11 : i64} {
  func.func @kernel(%arg0: i32, %arg1: memref<16x16xf32, #tpu.memory_space<vmem>>, %arg2: memref<3x128x128xf32, #tpu.memory_space<vmem>>, %arg3: memref<16x128xf32, #tpu.memory_space<vmem>>, %arg4: memref<16x128xf32, #tpu.memory_space<vmem>>, %arg5: memref<16x128xf32, #tpu.memory_space<vmem>>) attributes {dimension_semantics = [#tpu.dimension_semantics<parallel>], iteration_bounds = array<i64: 2>, scalar_prefetch = 0 : i64, scratch_operands = 0 : i64, tpu.core_type = #tpu.core_type<tc>, window_params = [{pipeline_mode = #tpu.pipeline_mode<synchronous>, transform_indices = @transform_0, window_bounds = array<i64: 16, 16>}, {pipeline_mode = #tpu.pipeline_mode<synchronous>, transform_indices = @transform_1, window_bounds = array<i64: 3, 128, 128>}, {pipeline_mode = #tpu.pipeline_mode<synchronous>, transform_indices = @transform_2, window_bounds = array<i64: 16, 128>}, {transform_indices = @transform_3, window_bounds = array<i64: 16, 128>}, {transform_indices = @transform_4, window_bounds = array<i64: 16, 128>}]} {
    %c0 = arith.constant 0 : index
    %c0_0 = arith.constant 0 : index
    %0 = vector.load %arg1[%c0, %c0_0] : memref<16x16xf32, #tpu.memory_space<vmem>>, vector<16x16xf32>
    %c0_1 = arith.constant 0 : index
    %c0_2 = arith.constant 0 : index
    %1 = vector.load %arg4[%c0_1, %c0_2] : memref<16x128xf32, #tpu.memory_space<vmem>>, vector<16x128xf32>
    %c0_3 = arith.constant 0 : index
    %c0_4 = arith.constant 0 : index
    %2 = vector.load %arg3[%c0_3, %c0_4] : memref<16x128xf32, #tpu.memory_space<vmem>>, vector<16x128xf32>
    %c0_5 = arith.constant 0 : index
    %c0_6 = arith.constant 0 : index
    %c0_7 = arith.constant 0 : index
    %3 = vector.load %arg2[%c0_5, %c0_6, %c0_7] : memref<3x128x128xf32, #tpu.memory_space<vmem>>, vector<1x128x128xf32>
    %4 = vector.shape_cast %3 : vector<1x128x128xf32> to vector<128x128xf32>
    %cst = arith.constant dense<0.000000e+00> : vector<16x128xf32>
    %5 = tpu.matmul %1, %4, %cst {dimension_numbers = #tpu.dot_dimension_numbers<[1], [0], [0], [1], [0, 0, 1, 1], [], []>} : vector<16x128xf32>, vector<128x128xf32>, vector<16x128xf32> -> vector<16x128xf32>
    %cst_8 = arith.constant dense<0.000000e+00> : vector<16x128xf32>
    %6 = tpu.matmul %0, %1, %cst_8 {dimension_numbers = #tpu.dot_dimension_numbers<[1], [0], [0], [1], [0, 0, 1, 1], [], []>} : vector<16x16xf32>, vector<16x128xf32>, vector<16x128xf32> -> vector<16x128xf32>
    %c1 = arith.constant 1 : index
    %c0_9 = arith.constant 0 : index
    %c0_10 = arith.constant 0 : index
    %7 = vector.load %arg2[%c1, %c0_9, %c0_10] : memref<3x128x128xf32, #tpu.memory_space<vmem>>, vector<1x128x128xf32>
    %8 = vector.shape_cast %7 : vector<1x128x128xf32> to vector<128x128xf32>
    %cst_11 = arith.constant dense<0.000000e+00> : vector<16x128xf32>
    %9 = tpu.matmul %6, %8, %cst_11 {dimension_numbers = #tpu.dot_dimension_numbers<[1], [0], [0], [1], [0, 0, 1, 1], [], []>} : vector<16x128xf32>, vector<128x128xf32>, vector<16x128xf32> -> vector<16x128xf32>
    %10 = arith.addf %5, %9 : vector<16x128xf32>
    %cst_12 = arith.constant dense<0.000000e+00> : vector<16x128xf32>
    %11 = tpu.matmul %0, %6, %cst_12 {dimension_numbers = #tpu.dot_dimension_numbers<[1], [0], [0], [1], [0, 0, 1, 1], [], []>} : vector<16x16xf32>, vector<16x128xf32>, vector<16x128xf32> -> vector<16x128xf32>
    %cst_13 = arith.constant 2.000000e+00 : f32
    %12 = vector.broadcast %cst_13 : f32 to vector<16x128xf32>
    %13 = arith.mulf %12, %11 : vector<16x128xf32>
    %14 = arith.subf %13, %1 : vector<16x128xf32>
    %c2 = arith.constant 2 : index
    %c0_14 = arith.constant 0 : index
    %c0_15 = arith.constant 0 : index
    %15 = vector.load %arg2[%c2, %c0_14, %c0_15] : memref<3x128x128xf32, #tpu.memory_space<vmem>>, vector<1x128x128xf32>
    %16 = vector.shape_cast %15 : vector<1x128x128xf32> to vector<128x128xf32>
    %cst_16 = arith.constant dense<0.000000e+00> : vector<16x128xf32>
    %17 = tpu.matmul %14, %16, %cst_16 {dimension_numbers = #tpu.dot_dimension_numbers<[1], [0], [0], [1], [0, 0, 1, 1], [], []>} : vector<16x128xf32>, vector<128x128xf32>, vector<16x128xf32> -> vector<16x128xf32>
    %18 = arith.addf %10, %17 : vector<16x128xf32>
    %19 = arith.addf %18, %2 : vector<16x128xf32>
    %c0_17 = arith.constant 0 : index
    %c0_18 = arith.constant 0 : index
    %20 = vector.load %arg5[%c0_17, %c0_18] : memref<16x128xf32, #tpu.memory_space<vmem>>, vector<16x128xf32>
    tpu.vector_store %arg5[%c0_17, %c0_18], %19 {strides = array<i32>} : memref<16x128xf32, #tpu.memory_space<vmem>>, vector<16x128xf32>,
    return
  }
  func.func @transform_0(%arg0: i32) -> (i32, i32) {
    %c0_i32 = arith.constant 0 : i32
    %c0_i32_0 = arith.constant 0 : i32
    %c0_i32_1 = arith.constant 0 : i32
    return %c0_i32, %c0_i32_0 : i32, i32
  }
  func.func @transform_1(%arg0: i32) -> (i32, i32, i32) {
    %c0_i32 = arith.constant 0 : i32
    %c0_i32_0 = arith.constant 0 : i32
    %c0_i32_1 = arith.constant 0 : i32
    %c0_i32_2 = arith.constant 0 : i32
    return %c0_i32, %c0_i32_0, %c0_i32_1 : i32, i32, i32
  }
  func.func @transform_2(%arg0: i32) -> (i32, i32) {
    %c0_i32 = arith.constant 0 : i32
    %c0_i32_0 = arith.constant 0 : i32
    %c0_i32_1 = arith.constant 0 : i32
    return %c0_i32, %c0_i32_0 : i32, i32
  }
  func.func @transform_3(%arg0: i32) -> (i32, i32) {
    %c0_i32 = arith.constant 0 : i32
    %c0_i32_0 = arith.constant 0 : i32
    return %c0_i32, %arg0 : i32, i32
  }
  func.func @transform_4(%arg0: i32) -> (i32, i32) {
    %c0_i32 = arith.constant 0 : i32
    %c0_i32_0 = arith.constant 0 : i32
    return %c0_i32, %arg0 : i32, i32
  }
}

</mosaic_0001>

<bundles_post_ra>
// kernel: tpu_custom_call.1
= control target key start
LH: loop header
LB: loop body
LE: loop exit
PB: predicated region body
PF: predicated region fallthrough
CT: control target
= control target key end

     0   :  { %9 = vsyncpa [#allocation3], 0  ;;  %s1122_s0 = inlined_call_operand.hbm [shape: f32[16,16], index: 0, kind: input, shape index: {}]   ;;  %s1123_s1 = inlined_call_operand.hbm [shape: f32[3,128,128], index: 1, kind: input, shape index: {}]   ;;  %s1124_s2 = inlined_call_operand.hbm [shape: f32[16,128], index: 2, kind: input, shape index: {}]   ;;  %s1125_s3 = inlined_call_operand.hbm [shape: f32[16,256], index: 3, kind: input, shape index: {}]   ;;  %s1126_s4 = inlined_call_operand.hbm [shape: f32[16,256], index: 4, kind: output, shape index: {}]  }
   0x1   :  { %10 = vsyncpa [#allocation6], 0 }
   0x2   :  { %11 = vsyncpa [#allocation9], 0 }
   0x3   :  { %13 = vsyncpa [#allocation9 + $0x1], 0 }
   0x4   :  { %14 = vsyncpa [#allocation4], 0 }
   0x5   :  { %16 = vsyncpa [#allocation4 + $0x1], 0  ;;  %s925_s15 = smov 0   ;;  %s927_s16 = smov 0  }
   0x6   :  { %s929_s17 = smov 0   ;;  %s931_s18 = smov 0  }
   0x7 LB: > { %s946_s19 = sadd.s32 4294967295, %s889_s18   ;;  %s574_s20 = sadd.s32 4294967294, %s889_s18   ;;  %s889_s18 = sphi %s931_s18, %s1137_s18   ;;  %s885_s17 = sphi %s929_s17, %s1136_s17   ;;  %s881_s16 = sphi %s927_s16, %s1135_s16   ;;  %s877_s15 = sphi %s925_s15, %s1134_s15  }
   0x8   : > { %p105_p0 = scmp.ne.s32.totalorder %s881_s16, %s877_s15  ;;  %p106_p1 = scmp.eq.s32.totalorder %s946_s19, 0 }
   0x9   : > { %p129_p2 = scmp.eq.s32.totalorder %s946_s19, 1  ;;  %p135_p3 = scmp.eq.s32.totalorder %s574_s20, 1 }
   0xa   : > { %p955_p4 = por %p106_p1, %p105_p0  ;;  %p575_p5 = scmp.ge.s32.totalorder %s889_s18, 1 }
   0xb   : > { %p960_p6 = por %p135_p3, %p105_p0  ;;  %p142_p7 = scmp.lt.s32.totalorder %s889_s18, 3 }
   0xc   : > { %s167_s26 = sshll.u32 %s1123_s1, 4  ;;  %s891_s27 = smov [#allocation5]   ;;  %s168_s26 = int_to_ptr.hbm [resolvable:$true] %s167_s26 }
   0xd   : > { %p965_p8 = pnand %p575_p5, %p142_p7  ;;  %s169_s28 = sshll.u32 %s891_s27, 4  ;;  %s170_s28 = int_to_ptr.vmem [resolvable:$true] %s169_s28 }
   0xe   : > { %s153_s6 = sshll.u32 %s1122_s0, 4  ;;  %s892_s7 = smov 128   ;;  %s154_s6 = int_to_ptr.hbm [resolvable:$true] %s153_s6 }
   0xf   : > { %p628_p9 = pneg %p965_p8  ;;  %s893_s8 = smov 8  }
  0x10   : > { %s894_s9 = smov [#allocation2]   ;;  %s181_s13 = sshll.u32 %s1124_s2, 4  ;;  %s182_s13 = int_to_ptr.hbm [resolvable:$true] %s181_s13 }
  0x11   : > { %p977_p11 = pnand %p628_p9, %p106_p1  ;;  %s155_s10 = sshll.u32 %s894_s9, 4  ;;  %s156_s10 = int_to_ptr.vmem [resolvable:$true] %s155_s10 }
  0x12   : > { %s895_s14 = smov [#allocation7]   ;;  %s998_s24 = sadd.s32 1, %s889_s18  }
  0x13   : > { %634 = dma.hbm_to_vmem [thread:$0]  (!%p977_p11), %s168_s26, 6144, %s170_s28, [#allocation6], %s892_s7, %s892_s7, %s893_s8  }
  0x14   : > { %631 = dma.hbm_to_vmem [thread:$0]  (!%p977_p11), %s154_s6, 256, %s156_s10, [#allocation3], %s892_s7, %s892_s7, %s893_s8  }
  0x15   : > { %s183_s20 = sshll.u32 %s895_s14, 4  ;;  %s89_s25 = ssub.s32 %s889_s18, %s998_s24  ;;  %s184_s20 = int_to_ptr.vmem [resolvable:$true] %s183_s20 }
  0x16   : > { %637 = dma.hbm_to_vmem [thread:$0]  (!%p977_p11), %s182_s13, 256, %s184_s20, [#allocation6], %s892_s7, %s892_s7, %s893_s8  }
  0x17   : > { %s92_s26 = sadd.s32 1, %s885_s17  ;;  %p90_p12 = scmp.eq.s32.totalorder %s89_s25, 0 }
  0x18   : > { %p99_p13 = scmp.ne.s32.totalorder %s885_s17, %s881_s16  ;;  %p100_p0 = scmp.eq.s32.totalorder %s889_s18, 0 }
  0x19   : > { %p649_p3 = scmp.lt.s32.totalorder %s889_s18, 2  ;;  %s197_s29 = sand.u32 1, %s885_s17  }
  0x1a   : > { %s1013_s27 = scalar_select %p90_p12, %s885_s17, %s92_s26  }
  0x1b   : > { %p101_p5 = por %p100_p0, %p99_p13  ;;  %p1017_p7 = por %p129_p2, %p99_p13 }
  0x1c   : > { %s581_s30 = sshll.u32 %s889_s18, 3  ;;  %s580_s5 = sshll.u32 %s197_s29, 4 }
  0x1d   : > { %s205_s10 = scalar_lea.hbm %s1125_s3, %s581_s30  ;;  %s201_s12 = scalar_lea.vmem [#allocation8], %s580_s5 }
  0x1e   : > { %s206_s11 = sshll.u32 %s205_s10, 4  ;;  %s208_s13 = sshll.u32 %s201_s12, 4  ;;  %s207_s11 = int_to_ptr.hbm [resolvable:$true] %s206_s11  ;;  %s209_s13 = int_to_ptr.vmem [resolvable:$true] %s208_s13 }
  0x1f   : > { %p1028_p9 = pnand %p649_p3, %p101_p5  ;;  %s198_s20 = scalar_lea.sflag [#allocation9], %s197_s29 }
  0x20   : > { %s785_s25 = sshra.s32 %s207_s11, 4  ;;  %s792_s6 = scalar_lea.hbm %s1125_s3, 32  ;;  %s786_s25 = int_to_ptr.hbm [resolvable:$true] %s785_s25 }
  0x21   : > { %s787_s26 = scalar_lea.hbm %s786_s25, 16  ;;  %p789_p11 = pneg %p1028_p9 }
  0x22   : > { %p788_p2 = scmp.ne.s32.totalorder %s786_s25, %s787_s26  ;;  %p793_p0 = scmp.lt.s32.totalorder %s786_s25, %s1125_s3 }
  0x23   : > { %p794_p3 = scmp.lt.s32.totalorder %s792_s6, %s787_s26 }
  0x24   : > { %p790_p12 = pnand %p789_p11, %p788_p2 }
  0x25   : > { %p795_p5 = por %p794_p3, %p793_p0 }
  0x26   : > { %p791_p13 = pneg %p790_p12 }
  0x28   : > { %p796_p10 = pnand %p795_p5, %p791_p13 }
  0x2a   : > { %799 = shalt.err (!%p796_p10)
}
  0x2b   : > { %s896_s29 = smov 256   ;;  %220 = sbr.rel (%p965_p8) target bundleno = 481 (0x1e1), region = 36 }
  0x2c   : > { %641 = dma.hbm_to_vmem [thread:$0]  (!%p1028_p9), %s207_s11, 256, %s209_s13, %s198_s20, %s896_s29, %s892_s7, %s893_s8  }
  0x30   : > { %860 = dma.done.wait (%p106_p1), [#allocation3], 256  }
  0x31   : > { %862 = vsyncadd (%p106_p1), [#allocation3], 4294967040 }
  0x32   : > { %864 = dma.done.wait (%p106_p1), [#allocation6], 6400  }
  0x33   : > { %866 = vsyncadd (%p106_p1), [#allocation6], 4294960896  ;;  %s1055_s12 = sand.u32 1, %s881_s16  }
  0x34   : > { %s586_s23 = sshll.u32 %s1055_s12, 4  ;;  %s238_s7 = scalar_lea.sflag [#allocation9], %s1055_s12 }
  0x35   : > { %s241_s8 = scalar_lea.vmem [#allocation8], %s586_s23 }
  0x36   : > { %868 = dma.done.wait (%p955_p4), %s238_s7, 256  }
  0x37   : > { %870 = vsyncadd (%p955_p4), %s238_s7, 4294967040  ;;  %v1065_v0 = vld [vmem:[%s241_s8 + $0x8] sm:$0xff]  ;;  %v1067_v1 = vld [vmem:[%s241_s8] sm:$0xff]  ;;  %vm289_vm0 = vcmask 130048   ;;  %s266_s21 = scalar_lea.vmem [#allocation10], %s586_s23  ;;  %s593_s11 = sshll.u32 %s946_s19, 3 }
  0x38   : > { %310 = vmatpush.msra.mxu0 %v1065_v0  ;;  %v1070_v2 = vld [vmem:[#allocation2] sm:$0xff]  ;;  %v288_v3 = vld [vmem:[#allocation5 + $0x78] sm:$0xff]  ;;  %v286_v6 = vld [vmem:[#allocation5 + $0x68] sm:$0xff]  ;;  %s466_s20 = scalar_lea.hbm %s1126_s4, %s593_s11  ;;  %s467_s25 = sshll.u32 %s266_s21, 4  ;;  %s468_s25 = int_to_ptr.vmem [resolvable:$true] %s467_s25 }
  0x39   : > { %v287_v4 = vld [vmem:[#allocation5 + $0x70] sm:$0xff]  ;;  %359 = vmatpush.msra.mxu2 %v288_v3  ;;  %v335_v5 = vld [vmem:[#allocation5 + $0xf8] sm:$0xff]  ;;  %v333_v8 = vld [vmem:[#allocation5 + $0xe8] sm:$0xff]  ;;  %s469_s26 = sshll.u32 %s466_s20, 4  ;;  %s456_s30 = scalar_lea.sflag [#allocation4], %s1055_s12  ;;  %s470_s26 = int_to_ptr.hbm [resolvable:$true] %s469_s26 }
  0x3a   : > { %311 = vmatpush.msra.mxu0 %v1067_v1  ;;  %336 = vmatpush.msra.mxu1 %v335_v5  ;;  %v334_v7 = vld [vmem:[#allocation5 + $0xf0] sm:$0xff]  ;;  %v285_v9 = vld [vmem:[#allocation5 + $0x60] sm:$0xff]  ;;  %v284_v11 = vld [vmem:[#allocation5 + $0x58] sm:$0xff]  ;;  %s829_s5 = sshra.s32 %s470_s26, 4  ;;  %s835_s10 = scalar_lea.hbm %s1126_s4, 32  ;;  %s830_s5 = int_to_ptr.hbm [resolvable:$true] %s829_s5 }
  0x3b   : > { %588 = vmatmul.msk.f32.vlgmr.msra.gmra.mxu0 %vm289_vm0, %v1070_v2  ;;  %360 = vmatpush.msra.mxu2 %v287_v4  ;;  %v332_v10 = vld [vmem:[#allocation5 + $0xe0] sm:$0xff]  ;;  %v331_v12 = vld [vmem:[#allocation5 + $0xd8] sm:$0xff]  ;;  %v283_v14 = vld [vmem:[#allocation5 + $0x50] sm:$0xff]  ;;  %s831_s19 = scalar_lea.hbm %s830_s5, 16  ;;  %p836_p10 = scmp.lt.s32.totalorder %s830_s5, %s1126_s4 }
  0x3c   : > { %337 = vmatpush.msra.mxu1 %v334_v7  ;;  %v1075_v13 = vld [vmem:[#allocation2 + $0x8] sm:$0xff]  ;;  %v330_v15 = vld [vmem:[#allocation5 + $0xd0] sm:$0xff]  ;;  %v282_v16 = vld [vmem:[#allocation5 + $0x48] sm:$0xff]  ;;  %p832_p1 = scmp.ne.s32.totalorder %s830_s5, %s831_s19  ;;  %p837_p9 = scmp.lt.s32.totalorder %s835_s10, %s831_s19 }
  0x3d   : > { %361 = vmatpush.msra.mxu2 %v286_v6  ;;  %v329_v17 = vld [vmem:[#allocation5 + $0xc8] sm:$0xff]  ;;  %v281_v18 = vld [vmem:[#allocation5 + $0x40] sm:$0xff]  ;;  %v280_v20 = vld [vmem:[#allocation5 + $0x38] sm:$0xff] }
  0x3e   : > { %338 = vmatpush.msra.mxu1 %v333_v8  ;;  %v328_v19 = vld [vmem:[#allocation5 + $0xc0] sm:$0xff]  ;;  %v327_v21 = vld [vmem:[#allocation5 + $0xb8] sm:$0xff]  ;;  %v279_v22 = vld [vmem:[#allocation5 + $0x30] sm:$0xff]  ;;  %p833_p4 = pnand %p832_p1, %p1017_p7  ;;  %p838_p2 = por %p837_p9, %p836_p10 }
  0x3f   : > { %362 = vmatpush.msra.mxu2 %v285_v9  ;;  %v326_v23 = vld [vmem:[#allocation5 + $0xb0] sm:$0xff]  ;;  %v278_v24 = vld [vmem:[#allocation5 + $0x28] sm:$0xff]  ;;  %v277_v26 = vld [vmem:[#allocation5 + $0x20] sm:$0xff] }
  0x40   : > { %339 = vmatpush.msra.mxu1 %v332_v10  ;;  %v325_v25 = vld [vmem:[#allocation5 + $0xa8] sm:$0xff]  ;;  %v324_v27 = vld [vmem:[#allocation5 + $0xa0] sm:$0xff]  ;;  %v276_v28 = vld [vmem:[#allocation5 + $0x18] sm:$0xff]  ;;  %p834_p8 = pneg %p833_p4 }
  0x41   : > { %363 = vmatpush.msra.mxu2 %v284_v11  ;;  %v323_v29 = vld [vmem:[#allocation5 + $0x98] sm:$0xff]  ;;  %v275_v30 = vld [vmem:[#allocation5 + $0x10] sm:$0xff]  ;;  %v274_v32 = vld [vmem:[#allocation5 + $0x8] sm:$0xff] }
  0x42   : > { %340 = vmatpush.msra.mxu1 %v331_v12  ;;  %v322_v31 = vld [vmem:[#allocation5 + $0x90] sm:$0xff]  ;;  %v321_v33 = vld [vmem:[#allocation5 + $0x88] sm:$0xff]  ;;  %v273_v34 = vld [vmem:[#allocation5] sm:$0xff]  ;;  %p839_p11 = pnand %p838_p2, %p834_p8 }
  0x43   : > { %589 = vmatmul.msk.f32.gmra.mxu0 %vm289_vm0, %v1075_v13  ;;  %364 = vmatpush.msra.mxu2 %v283_v14  ;;  %v320_v35 = vld [vmem:[#allocation5 + $0x80] sm:$0xff]  ;;  %v425_v36 = vld [vmem:[#allocation5 + $0x178] sm:$0xff]  ;;  %v424_v37 = vld [vmem:[#allocation5 + $0x170] sm:$0xff] }
  0x44   : > { %341 = vmatpush.msra.mxu1 %v330_v15  ;;  %426 = vmatpush.msrb.mxu0 %v425_v36  ;;  %v423_v38 = vld [vmem:[#allocation5 + $0x168] sm:$0xff]  ;;  %v422_v39 = vld [vmem:[#allocation5 + $0x160] sm:$0xff]  ;;  %v421_v40 = vld [vmem:[#allocation5 + $0x158] sm:$0xff] }
  0x45   : > { %365 = vmatpush.msra.mxu2 %v282_v16  ;;  %v420_v43 = vld [vmem:[#allocation5 + $0x150] sm:$0xff]  ;;  %v419_v44 = vld [vmem:[#allocation5 + $0x148] sm:$0xff]  ;;  %v418_v45 = vld [vmem:[#allocation5 + $0x140] sm:$0xff] }
  0x46   : > { %342 = vmatpush.msra.mxu1 %v329_v17  ;;  %427 = vmatpush.msrb.mxu0 %v424_v37  ;;  %v417_v46 = vld [vmem:[#allocation5 + $0x138] sm:$0xff]  ;;  %v416_v47 = vld [vmem:[#allocation5 + $0x130] sm:$0xff]  ;;  %v415_v48 = vld [vmem:[#allocation5 + $0x128] sm:$0xff] }
  0x47   : > { %366 = vmatpush.msra.mxu2 %v281_v18  ;;  %v414_v49 = vld [vmem:[#allocation5 + $0x120] sm:$0xff]  ;;  %v413_v50 = vld [vmem:[#allocation5 + $0x118] sm:$0xff]  ;;  %v412_v51 = vld [vmem:[#allocation5 + $0x110] sm:$0xff] }
  0x48   : > { %343 = vmatpush.msra.mxu1 %v328_v19  ;;  %428 = vmatpush.msrb.mxu0 %v423_v38  ;;  %v411_v52 = vld [vmem:[#allocation5 + $0x108] sm:$0xff]  ;;  %v410_v53 = vld [vmem:[#allocation5 + $0x100] sm:$0xff] }
  0x49   : > { %367 = vmatpush.msra.mxu2 %v280_v20  ;;  %v271_v63 = vld [vmem:[#allocation7] sm:$0xff]  ;;  %v272_v6 = vld [vmem:[#allocation7 + $0x8] sm:$0xff] }
  0x4a   : > { %344 = vmatpush.msra.mxu1 %v327_v21  ;;  %429 = vmatpush.msrb.mxu0 %v422_v39 }
  0x4b   : > { %368 = vmatpush.msra.mxu2 %v279_v22 }
  0x4c   : > { %345 = vmatpush.msra.mxu1 %v326_v23  ;;  %430 = vmatpush.msrb.mxu0 %v421_v40 }
  0x4d   : > { %369 = vmatpush.msra.mxu2 %v278_v24 }
  0x4e   : > { %346 = vmatpush.msra.mxu1 %v325_v25  ;;  %431 = vmatpush.msrb.mxu0 %v420_v43 }
  0x4f   : > { %370 = vmatpush.msra.mxu2 %v277_v26 }
  0x50   : > { %347 = vmatpush.msra.mxu1 %v324_v27  ;;  %432 = vmatpush.msrb.mxu0 %v419_v44 }
  0x51   : > { %371 = vmatpush.msra.mxu2 %v276_v28 }
  0x52   : > { %348 = vmatpush.msra.mxu1 %v323_v29  ;;  %433 = vmatpush.msrb.mxu0 %v418_v45 }
  0x53   : > { %372 = vmatpush.msra.mxu2 %v275_v30 }
  0x54   : > { %349 = vmatpush.msra.mxu1 %v322_v31  ;;  %434 = vmatpush.msrb.mxu0 %v417_v46 }
  0x55   : > { %373 = vmatpush.msra.mxu2 %v274_v32 }
  0x56   : > { %350 = vmatpush.msra.mxu1 %v321_v33  ;;  %435 = vmatpush.msrb.mxu0 %v416_v47 }
  0x57   : > { %374 = vmatpush.msra.mxu2 %v273_v34 }
  0x58   : > { %375 = vmatmul.f32.vlgmr.msra.gmra.mxu2 %v1067_v1  ;;  %351 = vmatpush.msra.mxu1 %v320_v35 }
  0x59   : > { %436 = vmatpush.msrb.mxu0 %v415_v48 }
  0x5b   : > { %437 = vmatpush.msrb.mxu0 %v414_v49 }
  0x5d   : > { %438 = vmatpush.msrb.mxu0 %v413_v50 }
  0x5f   : > { %439 = vmatpush.msrb.mxu0 %v412_v51 }
  0x60   : > { %378 = vmatmul.f32.gmra.mxu2 %v1065_v0 }
  0x61   : > { %440 = vmatpush.msrb.mxu0 %v411_v52 }
  0x63   : > { %441 = vmatpush.msrb.mxu0 %v410_v53 }
  0xb8   : > { %v313_v41 = vpop.f32.mrf.mxu0 }
  0xb9   : > { %352 = vmatmul.f32.vlgmr.msra.gmra.mxu1 %v313_v41 }
  0xc0   : > { %v316_v42 = vpop.f32.mrf.mxu0 }
  0xc1   : > { %355 = vmatmul.f32.gmra.mxu1 %v316_v42  ;;  %396 = vmatpush.msra.mxu3 %v316_v42 }
  0xc3   : > { %397 = vmatpush.msra.mxu3 %v313_v41 }
  0xc4   : > { %590 = vmatmul.msk.f32.vlgmr.msra.gmra.mxu3 %vm289_vm0, %v1070_v2 }
  0xc5   : > { %596 = vmatpush.msrb.mxu3 %v425_v36 }
  0xc7   : > { %597 = vmatpush.msrb.mxu3 %v424_v37 }
  0xc9   : > { %598 = vmatpush.msrb.mxu3 %v423_v38 }
  0xcb   : > { %599 = vmatpush.msrb.mxu3 %v422_v39 }
  0xcc   : > { %591 = vmatmul.msk.f32.gmra.mxu3 %vm289_vm0, %v1075_v13 }
  0xcd   : > { %600 = vmatpush.msrb.mxu3 %v421_v40 }
  0xcf   : > { %601 = vmatpush.msrb.mxu3 %v420_v43 }
  0xd1   : > { %602 = vmatpush.msrb.mxu3 %v419_v44 }
  0xd3   : > { %603 = vmatpush.msrb.mxu3 %v418_v45 }
  0xd5   : > { %604 = vmatpush.msrb.mxu3 %v417_v46 }
  0xd7   : > { %605 = vmatpush.msrb.mxu3 %v416_v47 }
  0xd9   : > { %606 = vmatpush.msrb.mxu3 %v415_v48 }
  0xdb   : > { %607 = vmatpush.msrb.mxu3 %v414_v49  ;;  %v376_v61 = vpop.f32.mrf.mxu2 }
  0xdd   : > { %608 = vmatpush.msrb.mxu3 %v413_v50 }
  0xdf   : > { %609 = vmatpush.msrb.mxu3 %v412_v51 }
  0xe1   : > { %610 = vmatpush.msrb.mxu3 %v411_v52 }
  0xe3   : > { %611 = vmatpush.msrb.mxu3 %v410_v53 }
 0x136   : > { %v353_v60 = vpop.f32.mrf.mxu1 }
 0x137   : > { %v377_v62 = vadd.f32 %v376_v61, %v353_v60 }
 0x13e   : > { %v356_v5 = vpop.f32.mrf.mxu1 }
 0x147   : > { %v399_v54 = vpop.f32.mrf.mxu3 }
 0x148   : > { %v405_v55 = vmul.f32 2.0, %v399_v54 }
 0x14a   : > { %v407_v56 = vsub.f32 %v405_v55, %v1067_v1  ;;  %v379_v1 = vpop.f32.mrf.mxu2 }
 0x14c   : > { %442 = vmatmul.f32.vlgmr.msrb.gmra.mxu0 %v407_v56 }
 0x14f   : > { %v402_v57 = vpop.f32.mrf.mxu3 }
 0x150   : > { %v406_v58 = vmul.f32 2.0, %v402_v57 }
 0x152   : > { %v408_v59 = vsub.f32 %v406_v58, %v1065_v0  ;;  %v380_v0 = vadd.f32 %v379_v1, %v356_v5 }
 0x154   : > { %445 = vmatmul.f32.vlgmr.msrb.gmra.mxu3 %v408_v59 }
 0x1c9   : > { %v443_v2 = vpop.f32.mrf.mxu0 }
 0x1ca   : > { %v449_v3 = vadd.f32 %v443_v2, %v377_v62 }
 0x1cc   : > { %v451_v4 = vadd.f32 %v449_v3, %v271_v63 }
 0x1ce   : > { %453 = vst [vmem:[%s266_s21] sm:$0xff] %v451_v4 }
 0x1d7   : > { %v446_v7 = vpop.f32.mrf.mxu3 }
 0x1d8   : > { %v450_v8 = vadd.f32 %v446_v7, %v380_v0 }
 0x1da   : > { %v452_v9 = vadd.f32 %v450_v8, %v272_v6 }
 0x1dc   : > { %454 = vst [vmem:[%s266_s21 + $0x8] sm:$0xff] %v452_v9 }
 0x1dd   : > { %842 = shalt.err (!%p839_p11)
}
 0x1de   : > { %s897_s12 = smov 128   ;;  %s898_s7 = smov 256  }
 0x1df   : > { %s899_s8 = smov 8  }
 0x1e0   : > { %626 = dma.vmem_to_hbm [thread:$0]  (%p1017_p7), %s468_s25, 256, %s470_s26, %s456_s30, %s897_s12, %s898_s7, %s899_s8  }
 0x1e1 PF: > { %s484_s21 = sand.u32 1, %s877_s15   ;;  %p1133_p12 = scmp.ge.s32.totalorder %s889_s18, 2 }
 0x1e2   : > { %s485_s11 = scalar_lea.sflag [#allocation4], %s484_s21 }
 0x1e3   : > { %p643_p13 = pnand %p1133_p12, %p960_p6 }
 0x1e5   : > { %p644_p0 = pneg %p643_p13 }
 0x1e7   : > { %872 = dma.done.wait (%p644_p0), %s485_s11, 256  }
 0x1e8   : > { %874 = vsyncadd (%p644_p0), %s485_s11, 4294967040  ;;  %p19_p3 = scmp.ge.s32.totalorder %s998_s24, 4   ;;  %s1134_s15 = smov %s881_s16 }
 0x1e9   : > { %s1135_s16 = smov %s885_s17  ;;  %s1136_s17 = smov %s1013_s27 }
 0x1ea   : > { %s1137_s18 = smov %s998_s24  ;;  %21 = sbr.rel (!%p19_p3) target bundleno = 7 (0x7), region = 96 }
 0x1ef   :  { %491 = vsyncpa [#allocation3], 1 }
 0x1f0   :  { %493 = vsyncpa [#allocation3 + $0x1], 1 }
 0x1f1   :  { %494 = vsyncpa [#allocation6], 1 }
 0x1f2   :  { %495 = vsyncpa [#allocation9], 1 }
 0x1f3   :  { %497 = vsyncpa [#allocation9 + $0x1], 1 }
 0x1f4   :  { %498 = vsyncpa [#allocation4], 1 }
 0x1f5   :  { %500 = vsyncpa [#allocation4 + $0x1], 1 }

// kernel: tpu_custom_call.1
= control target key start
LH: loop header
LB: loop body
LE: loop exit
PB: predicated region body
PF: predicated region fallthrough
CT: control target
= control target key end

     0   :  { %9 = vsyncpa [#allocation3], 0  ;;  %s1122_s0 = inlined_call_operand.hbm [shape: f32[16,16], index: 0, kind: input, shape index: {}]   ;;  %s1123_s1 = inlined_call_operand.hbm [shape: f32[3,128,128], index: 1, kind: input, shape index: {}]   ;;  %s1124_s2 = inlined_call_operand.hbm [shape: f32[16,128], index: 2, kind: input, shape index: {}]   ;;  %s1125_s3 = inlined_call_operand.hbm [shape: f32[16,256], index: 3, kind: input, shape index: {}]   ;;  %s1126_s4 = inlined_call_operand.hbm [shape: f32[16,256], index: 4, kind: output, shape index: {}]  }
   0x1   :  { %10 = vsyncpa [#allocation6], 0 }
   0x2   :  { %11 = vsyncpa [#allocation9], 0 }
   0x3   :  { %13 = vsyncpa [#allocation9 + $0x1], 0 }
   0x4   :  { %14 = vsyncpa [#allocation4], 0 }
   0x5   :  { %16 = vsyncpa [#allocation4 + $0x1], 0  ;;  %s925_s15 = smov 0   ;;  %s927_s16 = smov 0  }
   0x6   :  { %s929_s17 = smov 0   ;;  %s931_s18 = smov 0  }
   0x7 LB: > { %s946_s19 = sadd.s32 4294967295, %s889_s18   ;;  %s574_s20 = sadd.s32 4294967294, %s889_s18   ;;  %s889_s18 = sphi %s931_s18, %s1137_s18   ;;  %s885_s17 = sphi %s929_s17, %s1136_s17   ;;  %s881_s16 = sphi %s927_s16, %s1135_s16   ;;  %s877_s15 = sphi %s925_s15, %s1134_s15  }
   0x8   : > { %p105_p0 = scmp.ne.s32.totalorder %s881_s16, %s877_s15  ;;  %p106_p1 = scmp.eq.s32.totalorder %s946_s19, 0 }
   0x9   : > { %p129_p2 = scmp.eq.s32.totalorder %s946_s19, 1  ;;  %p135_p3 = scmp.eq.s32.totalorder %s574_s20, 1 }
   0xa   : > { %p955_p4 = por %p106_p1, %p105_p0  ;;  %p575_p5 = scmp.ge.s32.totalorder %s889_s18, 1 }
   0xb   : > { %p960_p6 = por %p135_p3, %p105_p0  ;;  %p142_p7 = scmp.lt.s32.totalorder %s889_s18, 3 }
   0xc   : > { %s167_s26 = sshll.u32 %s1123_s1, 4  ;;  %s891_s27 = smov [#allocation5]   ;;  %s168_s26 = int_to_ptr.hbm [resolvable:$true] %s167_s26 }
   0xd   : > { %p965_p8 = pnand %p575_p5, %p142_p7  ;;  %s169_s28 = sshll.u32 %s891_s27, 4  ;;  %s170_s28 = int_to_ptr.vmem [resolvable:$true] %s169_s28 }
   0xe   : > { %s153_s6 = sshll.u32 %s1122_s0, 4  ;;  %s892_s7 = smov 128   ;;  %s154_s6 = int_to_ptr.hbm [resolvable:$true] %s153_s6 }
   0xf   : > { %p628_p9 = pneg %p965_p8  ;;  %s893_s8 = smov 8  }
  0x10   : > { %s894_s9 = smov [#allocation2]   ;;  %s181_s13 = sshll.u32 %s1124_s2, 4  ;;  %s182_s13 = int_to_ptr.hbm [resolvable:$true] %s181_s13 }
  0x11   : > { %p977_p11 = pnand %p628_p9, %p106_p1  ;;  %s155_s10 = sshll.u32 %s894_s9, 4  ;;  %s156_s10 = int_to_ptr.vmem [resolvable:$true] %s155_s10 }
  0x12   : > { %s895_s14 = smov [#allocation7]   ;;  %s998_s24 = sadd.s32 1, %s889_s18  }
  0x13   : > { %634 = dma.hbm_to_vmem [thread:$0]  (!%p977_p11), %s168_s26, 6144, %s170_s28, [#allocation6], %s892_s7, %s892_s7, %s893_s8  }
  0x14   : > { %631 = dma.hbm_to_vmem [thread:$0]  (!%p977_p11), %s154_s6, 256, %s156_s10, [#allocation3], %s892_s7, %s892_s7, %s893_s8  }
  0x15   : > { %s183_s20 = sshll.u32 %s895_s14, 4  ;;  %s89_s25 = ssub.s32 %s889_s18, %s998_s24  ;;  %s184_s20 = int_to_ptr.vmem [resolvable:$true] %s183_s20 }
  0x16   : > { %637 = dma.hbm_to_vmem [thread:$0]  (!%p977_p11), %s182_s13, 256, %s184_s20, [#allocation6], %s892_s7, %s892_s7, %s893_s8  }
  0x17   : > { %s92_s26 = sadd.s32 1, %s885_s17  ;;  %p90_p12 = scmp.eq.s32.totalorder %s89_s25, 0 }
  0x18   : > { %p99_p13 = scmp.ne.s32.totalorder %s885_s17, %s881_s16  ;;  %p100_p0 = scmp.eq.s32.totalorder %s889_s18, 0 }
  0x19   : > { %p649_p3 = scmp.lt.s32.totalorder %s889_s18, 2  ;;  %s197_s29 = sand.u32 1, %s885_s17  }
  0x1a   : > { %s1013_s27 = scalar_select %p90_p12, %s885_s17, %s92_s26  }
  0x1b   : > { %p101_p5 = por %p100_p0, %p99_p13  ;;  %p1017_p7 = por %p129_p2, %p99_p13 }
  0x1c   : > { %s581_s30 = sshll.u32 %s889_s18, 3  ;;  %s580_s5 = sshll.u32 %s197_s29, 4 }
  0x1d   : > { %s205_s10 = scalar_lea.hbm %s1125_s3, %s581_s30  ;;  %s201_s12 = scalar_lea.vmem [#allocation8], %s580_s5 }
  0x1e   : > { %s206_s11 = sshll.u32 %s205_s10, 4  ;;  %s208_s13 = sshll.u32 %s201_s12, 4  ;;  %s207_s11 = int_to_ptr.hbm [resolvable:$true] %s206_s11  ;;  %s209_s13 = int_to_ptr.vmem [resolvable:$true] %s208_s13 }
  0x1f   : > { %p1028_p9 = pnand %p649_p3, %p101_p5  ;;  %s198_s20 = scalar_lea.sflag [#allocation9], %s197_s29 }
  0x20   : > { %s785_s25 = sshra.s32 %s207_s11, 4  ;;  %s792_s6 = scalar_lea.hbm %s1125_s3, 32  ;;  %s786_s25 = int_to_ptr.hbm [resolvable:$true] %s785_s25 }
  0x21   : > { %s787_s26 = scalar_lea.hbm %s786_s25, 16  ;;  %p789_p11 = pneg %p1028_p9 }
  0x22   : > { %p788_p2 = scmp.ne.s32.totalorder %s786_s25, %s787_s26  ;;  %p793_p0 = scmp.lt.s32.totalorder %s786_s25, %s1125_s3 }
  0x23   : > { %p794_p3 = scmp.lt.s32.totalorder %s792_s6, %s787_s26 }
  0x24   : > { %p790_p12 = pnand %p789_p11, %p788_p2 }
  0x25   : > { %p795_p5 = por %p794_p3, %p793_p0 }
  0x26   : > { %p791_p13 = pneg %p790_p12 }
  0x28   : > { %p796_p10 = pnand %p795_p5, %p791_p13 }
  0x2a   : > { %799 = shalt.err (!%p796_p10)
}
  0x2b   : > { %s896_s29 = smov 256   ;;  %220 = sbr.rel (%p965_p8) target bundleno = 481 (0x1e1), region = 36 }
  0x2c   : > { %641 = dma.hbm_to_vmem [thread:$0]  (!%p1028_p9), %s207_s11, 256, %s209_s13, %s198_s20, %s896_s29, %s892_s7, %s893_s8  }
  0x30   : > { %860 = dma.done.wait (%p106_p1), [#allocation3], 256  }
  0x31   : > { %862 = vsyncadd (%p106_p1), [#allocation3], 4294967040 }
  0x32   : > { %864 = dma.done.wait (%p106_p1), [#allocation6], 6400  }
  0x33   : > { %866 = vsyncadd (%p106_p1), [#allocation6], 4294960896  ;;  %s1055_s12 = sand.u32 1, %s881_s16  }
  0x34   : > { %s586_s23 = sshll.u32 %s1055_s12, 4  ;;  %s238_s7 = scalar_lea.sflag [#allocation9], %s1055_s12 }
  0x35   : > { %s241_s8 = scalar_lea.vmem [#allocation8], %s586_s23 }
  0x36   : > { %868 = dma.done.wait (%p955_p4), %s238_s7, 256  }
  0x37   : > { %870 = vsyncadd (%p955_p4), %s238_s7, 4294967040  ;;  %v1065_v0 = vld [vmem:[%s241_s8 + $0x8] sm:$0xff]  ;;  %v1067_v1 = vld [vmem:[%s241_s8] sm:$0xff]  ;;  %vm289_vm0 = vcmask 130048   ;;  %s266_s21 = scalar_lea.vmem [#allocation10], %s586_s23  ;;  %s593_s11 = sshll.u32 %s946_s19, 3 }
  0x38   : > { %310 = vmatpush.msra.mxu0 %v1065_v0  ;;  %v1070_v2 = vld [vmem:[#allocation2] sm:$0xff]  ;;  %v288_v3 = vld [vmem:[#allocation5 + $0x78] sm:$0xff]  ;;  %v286_v6 = vld [vmem:[#allocation5 + $0x68] sm:$0xff]  ;;  %s466_s20 = scalar_lea.hbm %s1126_s4, %s593_s11  ;;  %s467_s25 = sshll.u32 %s266_s21, 4  ;;  %s468_s25 = int_to_ptr.vmem [resolvable:$true] %s467_s25 }
  0x39   : > { %v287_v4 = vld [vmem:[#allocation5 + $0x70] sm:$0xff]  ;;  %359 = vmatpush.msra.mxu2 %v288_v3  ;;  %v335_v5 = vld [vmem:[#allocation5 + $0xf8] sm:$0xff]  ;;  %v333_v8 = vld [vmem:[#allocation5 + $0xe8] sm:$0xff]  ;;  %s469_s26 = sshll.u32 %s466_s20, 4  ;;  %s456_s30 = scalar_lea.sflag [#allocation4], %s1055_s12  ;;  %s470_s26 = int_to_ptr.hbm [resolvable:$true] %s469_s26 }
  0x3a   : > { %311 = vmatpush.msra.mxu0 %v1067_v1  ;;  %336 = vmatpush.msra.mxu1 %v335_v5  ;;  %v334_v7 = vld [vmem:[#allocation5 + $0xf0] sm:$0xff]  ;;  %v285_v9 = vld [vmem:[#allocation5 + $0x60] sm:$0xff]  ;;  %v284_v11 = vld [vmem:[#allocation5 + $0x58] sm:$0xff]  ;;  %s829_s5 = sshra.s32 %s470_s26, 4  ;;  %s835_s10 = scalar_lea.hbm %s1126_s4, 32  ;;  %s830_s5 = int_to_ptr.hbm [resolvable:$true] %s829_s5 }
  0x3b   : > { %588 = vmatmul.msk.f32.vlgmr.msra.gmra.mxu0 %vm289_vm0, %v1070_v2  ;;  %360 = vmatpush.msra.mxu2 %v287_v4  ;;  %v332_v10 = vld [vmem:[#allocation5 + $0xe0] sm:$0xff]  ;;  %v331_v12 = vld [vmem:[#allocation5 + $0xd8] sm:$0xff]  ;;  %v283_v14 = vld [vmem:[#allocation5 + $0x50] sm:$0xff]  ;;  %s831_s19 = scalar_lea.hbm %s830_s5, 16  ;;  %p836_p10 = scmp.lt.s32.totalorder %s830_s5, %s1126_s4 }
  0x3c   : > { %337 = vmatpush.msra.mxu1 %v334_v7  ;;  %v1075_v13 = vld [vmem:[#allocation2 + $0x8] sm:$0xff]  ;;  %v330_v15 = vld [vmem:[#allocation5 + $0xd0] sm:$0xff]  ;;  %v282_v16 = vld [vmem:[#allocation5 + $0x48] sm:$0xff]  ;;  %p832_p1 = scmp.ne.s32.totalorder %s830_s5, %s831_s19  ;;  %p837_p9 = scmp.lt.s32.totalorder %s835_s10, %s831_s19 }
  0x3d   : > { %361 = vmatpush.msra.mxu2 %v286_v6  ;;  %v329_v17 = vld [vmem:[#allocation5 + $0xc8] sm:$0xff]  ;;  %v281_v18 = vld [vmem:[#allocation5 + $0x40] sm:$0xff]  ;;  %v280_v20 = vld [vmem:[#allocation5 + $0x38] sm:$0xff] }
  0x3e   : > { %338 = vmatpush.msra.mxu1 %v333_v8  ;;  %v328_v19 = vld [vmem:[#allocation5 + $0xc0] sm:$0xff]  ;;  %v327_v21 = vld [vmem:[#allocation5 + $0xb8] sm:$0xff]  ;;  %v279_v22 = vld [vmem:[#allocation5 + $0x30] sm:$0xff]  ;;  %p833_p4 = pnand %p832_p1, %p1017_p7  ;;  %p838_p2 = por %p837_p9, %p836_p10 }
  0x3f   : > { %362 = vmatpush.msra.mxu2 %v285_v9  ;;  %v326_v23 = vld [vmem:[#allocation5 + $0xb0] sm:$0xff]  ;;  %v278_v24 = vld [vmem:[#allocation5 + $0x28] sm:$0xff]  ;;  %v277_v26 = vld [vmem:[#allocation5 + $0x20] sm:$0xff] }
  0x40   : > { %339 = vmatpush.msra.mxu1 %v332_v10  ;;  %v325_v25 = vld [vmem:[#allocation5 + $0xa8] sm:$0xff]  ;;  %v324_v27 = vld [vmem:[#allocation5 + $0xa0] sm:$0xff]  ;;  %v276_v28 = vld [vmem:[#allocation5 + $0x18] sm:$0xff]  ;;  %p834_p8 = pneg %p833_p4 }
  0x41   : > { %363 = vmatpush.msra.mxu2 %v284_v11  ;;  %v323_v29 = vld [vmem:[#allocation5 + $0x98] sm:$0xff]  ;;  %v275_v30 = vld [vmem:[#allocation5 + $0x10] sm:$0xff]  ;;  %v274_v32 = vld [vmem:[#allocation5 + $0x8] sm:$0xff] }
  0x42   : > { %340 = vmatpush.msra.mxu1 %v331_v12  ;;  %v322_v31 = vld [vmem:[#allocation5 + $0x90] sm:$0xff]  ;;  %v321_v33 = vld [vmem:[#allocation5 + $0x88] sm:$0xff]  ;;  %v273_v34 = vld [vmem:[#allocation5] sm:$0xff]  ;;  %p839_p11 = pnand %p838_p2, %p834_p8 }
  0x43   : > { %589 = vmatmul.msk.f32.gmra.mxu0 %vm289_vm0, %v1075_v13  ;;  %364 = vmatpush.msra.mxu2 %v283_v14  ;;  %v320_v35 = vld [vmem:[#allocation5 + $0x80] sm:$0xff]  ;;  %v425_v36 = vld [vmem:[#allocation5 + $0x178] sm:$0xff]  ;;  %v424_v37 = vld [vmem:[#allocation5 + $0x170] sm:$0xff] }
  0x44   : > { %341 = vmatpush.msra.mxu1 %v330_v15  ;;  %426 = vmatpush.msrb.mxu0 %v425_v36  ;;  %v423_v38 = vld [vmem:[#allocation5 + $0x168] sm:$0xff]  ;;  %v422_v39 = vld [vmem:[#allocation5 + $0x160] sm:$0xff]  ;;  %v421_v40 = vld [vmem:[#allocation5 + $0x158] sm:$0xff] }
  0x45   : > { %365 = vmatpush.msra.mxu2 %v282_v16  ;;  %v420_v43 = vld [vmem:[#allocation5 + $0x150] sm:$0xff]  ;;  %v419_v44 = vld [vmem:[#allocation5 + $0x148] sm:$0xff]  ;;  %v418_v45 = vld [vmem:[#allocation5 + $0x140] sm:$0xff] }
  0x46   : > { %342 = vmatpush.msra.mxu1 %v329_v17  ;;  %427 = vmatpush.msrb.mxu0 %v424_v37  ;;  %v417_v46 = vld [vmem:[#allocation5 + $0x138] sm:$0xff]  ;;  %v416_v47 = vld [vmem:[#allocation5 + $0x130] sm:$0xff]  ;;  %v415_v48 = vld [vmem:[#allocation5 + $0x128] sm:$0xff] }
  0x47   : > { %366 = vmatpush.msra.mxu2 %v281_v18  ;;  %v414_v49 = vld [vmem:[#allocation5 + $0x120] sm:$0xff]  ;;  %v413_v50 = vld [vmem:[#allocation5 + $0x118] sm:$0xff]  ;;  %v412_v51 = vld [vmem:[#allocation5 + $0x110] sm:$0xff] }
  0x48   : > { %343 = vmatpush.msra.mxu1 %v328_v19  ;;  %428 = vmatpush.msrb.mxu0 %v423_v38  ;;  %v411_v52 = vld [vmem:[#allocation5 + $0x108] sm:$0xff]  ;;  %v410_v53 = vld [vmem:[#allocation5 + $0x100] sm:$0xff] }
  0x49   : > { %367 = vmatpush.msra.mxu2 %v280_v20  ;;  %v271_v63 = vld [vmem:[#allocation7] sm:$0xff]  ;;  %v272_v6 = vld [vmem:[#allocation7 + $0x8] sm:$0xff] }
  0x4a   : > { %344 = vmatpush.msra.mxu1 %v327_v21  ;;  %429 = vmatpush.msrb.mxu0 %v422_v39 }
  0x4b   : > { %368 = vmatpush.msra.mxu2 %v279_v22 }
  0x4c   : > { %345 = vmatpush.msra.mxu1 %v326_v23  ;;  %430 = vmatpush.msrb.mxu0 %v421_v40 }
  0x4d   : > { %369 = vmatpush.msra.mxu2 %v278_v24 }
  0x4e   : > { %346 = vmatpush.msra.mxu1 %v325_v25  ;;  %431 = vmatpush.msrb.mxu0 %v420_v43 }
  0x4f   : > { %370 = vmatpush.msra.mxu2 %v277_v26 }
  0x50   : > { %347 = vmatpush.msra.mxu1 %v324_v27  ;;  %432 = vmatpush.msrb.mxu0 %v419_v44 }
  0x51   : > { %371 = vmatpush.msra.mxu2 %v276_v28 }
  0x52   : > { %348 = vmatpush.msra.mxu1 %v323_v29  ;;  %433 = vmatpush.msrb.mxu0 %v418_v45 }
  0x53   : > { %372 = vmatpush.msra.mxu2 %v275_v30 }
  0x54   : > { %349 = vmatpush.msra.mxu1 %v322_v31  ;;  %434 = vmatpush.msrb.mxu0 %v417_v46 }
  0x55   : > { %373 = vmatpush.msra.mxu2 %v274_v32 }
  0x56   : > { %350 = vmatpush.msra.mxu1 %v321_v33  ;;  %435 = vmatpush.msrb.mxu0 %v416_v47 }
  0x57   : > { %374 = vmatpush.msra.mxu2 %v273_v34 }
  0x58   : > { %375 = vmatmul.f32.vlgmr.msra.gmra.mxu2 %v1067_v1  ;;  %351 = vmatpush.msra.mxu1 %v320_v35 }
  0x59   : > { %436 = vmatpush.msrb.mxu0 %v415_v48 }
  0x5b   : > { %437 = vmatpush.msrb.mxu0 %v414_v49 }
  0x5d   : > { %438 = vmatpush.msrb.mxu0 %v413_v50 }
  0x5f   : > { %439 = vmatpush.msrb.mxu0 %v412_v51 }
  0x60   : > { %378 = vmatmul.f32.gmra.mxu2 %v1065_v0 }
  0x61   : > { %440 = vmatpush.msrb.mxu0 %v411_v52 }
  0x63   : > { %441 = vmatpush.msrb.mxu0 %v410_v53 }
  0xb8   : > { %v313_v41 = vpop.f32.mrf.mxu0 }
  0xb9   : > { %352 = vmatmul.f32.vlgmr.msra.gmra.mxu1 %v313_v41 }
  0xc0   : > { %v316_v42 = vpop.f32.mrf.mxu0 }
  0xc1   : > { %355 = vmatmul.f32.gmra.mxu1 %v316_v42  ;;  %396 = vmatpush.msra.mxu3 %v316_v42 }
  0xc3   : > { %397 = vmatpush.msra.mxu3 %v313_v41 }
  0xc4   : > { %590 = vmatmul.msk.f32.vlgmr.msra.gmra.mxu3 %vm289_vm0, %v1070_v2 }
  0xc5   : > { %596 = vmatpush.msrb.mxu3 %v425_v36 }
  0xc7   : > { %597 = vmatpush.msrb.mxu3 %v424_v37 }
  0xc9   : > { %598 = vmatpush.msrb.mxu3 %v423_v38 }
  0xcb   : > { %599 = vmatpush.msrb.mxu3 %v422_v39 }
  0xcc   : > { %591 = vmatmul.msk.f32.gmra.mxu3 %vm289_vm0, %v1075_v13 }
  0xcd   : > { %600 = vmatpush.msrb.mxu3 %v421_v40 }
  0xcf   : > { %601 = vmatpush.msrb.mxu3 %v420_v43 }
  0xd1   : > { %602 = vmatpush.msrb.mxu3 %v419_v44 }
  0xd3   : > { %603 = vmatpush.msrb.mxu3 %v418_v45 }
  0xd5   : > { %604 = vmatpush.msrb.mxu3 %v417_v46 }
  0xd7   : > { %605 = vmatpush.msrb.mxu3 %v416_v47 }
  0xd9   : > { %606 = vmatpush.msrb.mxu3 %v415_v48 }
  0xdb   : > { %607 = vmatpush.msrb.mxu3 %v414_v49  ;;  %v376_v61 = vpop.f32.mrf.mxu2 }
  0xdd   : > { %608 = vmatpush.msrb.mxu3 %v413_v50 }
  0xdf   : > { %609 = vmatpush.msrb.mxu3 %v412_v51 }
  0xe1   : > { %610 = vmatpush.msrb.mxu3 %v411_v52 }
  0xe3   : > { %611 = vmatpush.msrb.mxu3 %v410_v53 }
 0x136   : > { %v353_v60 = vpop.f32.mrf.mxu1 }
 0x137   : > { %v377_v62 = vadd.f32 %v376_v61, %v353_v60 }
 0x13e   : > { %v356_v5 = vpop.f32.mrf.mxu1 }
 0x147   : > { %v399_v54 = vpop.f32.mrf.mxu3 }
 0x148   : > { %v405_v55 = vmul.f32 2.0, %v399_v54 }
 0x14a   : > { %v407_v56 = vsub.f32 %v405_v55, %v1067_v1  ;;  %v379_v1 = vpop.f32.mrf.mxu2 }
 0x14c   : > { %442 = vmatmul.f32.vlgmr.msrb.gmra.mxu0 %v407_v56 }
 0x14f   : > { %v402_v57 = vpop.f32.mrf.mxu3 }
 0x150   : > { %v406_v58 = vmul.f32 2.0, %v402_v57 }
 0x152   : > { %v408_v59 = vsub.f32 %v406_v58, %v1065_v0  ;;  %v380_v0 = vadd.f32 %v379_v1, %v356_v5 }
 0x154   : > { %445 = vmatmul.f32.vlgmr.msrb.gmra.mxu3 %v408_v59 }
 0x1c9   : > { %v443_v2 = vpop.f32.mrf.mxu0 }
 0x1ca   : > { %v449_v3 = vadd.f32 %v443_v2, %v377_v62 }
 0x1cc   : > { %v451_v4 = vadd.f32 %v449_v3, %v271_v63 }
 0x1ce   : > { %453 = vst [vmem:[%s266_s21] sm:$0xff] %v451_v4 }
 0x1d7   : > { %v446_v7 = vpop.f32.mrf.mxu3 }
 0x1d8   : > { %v450_v8 = vadd.f32 %v446_v7, %v380_v0 }
 0x1da   : > { %v452_v9 = vadd.f32 %v450_v8, %v272_v6 }
 0x1dc   : > { %454 = vst [vmem:[%s266_s21 + $0x8] sm:$0xff] %v452_v9 }
 0x1dd   : > { %842 = shalt.err (!%p839_p11)
}
 0x1de   : > { %s897_s12 = smov 128   ;;  %s898_s7 = smov 256  }
 0x1df   : > { %s899_s8 = smov 8  }
 0x1e0   : > { %626 = dma.vmem_to_hbm [thread:$0]  (%p1017_p7), %s468_s25, 256, %s470_s26, %s456_s30, %s897_s12, %s898_s7, %s899_s8  }
 0x1e1 PF: > { %s484_s21 = sand.u32 1, %s877_s15   ;;  %p1133_p12 = scmp.ge.s32.totalorder %s889_s18, 2 }
 0x1e2   : > { %s485_s11 = scalar_lea.sflag [#allocation4], %s484_s21 }
 0x1e3   : > { %p643_p13 = pnand %p1133_p12, %p960_p6 }
 0x1e5   : > { %p644_p0 = pneg %p643_p13 }
 0x1e7   : > { %872 = dma.done.wait (%p644_p0), %s485_s11, 256  }
 0x1e8   : > { %874 = vsyncadd (%p644_p0), %s485_s11, 4294967040  ;;  %p19_p3 = scmp.ge.s32.totalorder %s998_s24, 4   ;;  %s1134_s15 = smov %s881_s16 }
 0x1e9   : > { %s1135_s16 = smov %s885_s17  ;;  %s1136_s17 = smov %s1013_s27 }
 0x1ea   : > { %s1137_s18 = smov %s998_s24  ;;  %21 = sbr.rel (!%p19_p3) target bundleno = 7 (0x7), region = 96 }
 0x1ef   :  { %491 = vsyncpa [#allocation3], 1 }
 0x1f0   :  { %493 = vsyncpa [#allocation3 + $0x1], 1 }
 0x1f1   :  { %494 = vsyncpa [#allocation6], 1 }
 0x1f2   :  { %495 = vsyncpa [#allocation9], 1 }
 0x1f3   :  { %497 = vsyncpa [#allocation9 + $0x1], 1 }
 0x1f4   :  { %498 = vsyncpa [#allocation4], 1 }
 0x1f5   :  { %500 = vsyncpa [#allocation4 + $0x1], 1 }

</bundles_post_ra>
